<compile_context>
chip_gen: v7x
topology: tpu7x:2x2x1
jax: 0.10.0
libtpu: 0.0.40
codegen_flags: <defaults>
</compile_context>

<pallas_src>
import functools

import numpy as np
import jax
import jax.numpy as jnp
from jax import lax
from jax.experimental import pallas as pl
from jax.experimental.pallas import tpu as pltpu

_BN_EPS = 1e-5


def _round_up(a, m):
    return ((a + m - 1) // m) * m


def _pick_lane_tile(m_cols):
    for t in (512, 256, 128):
        if t <= m_cols and m_cols % t == 0:
            return t
    return 128  # unreachable: m_cols is a positive multiple of 128


# -----------------------------------------------------------------------------
# Pass 1: conv matmul (tiled over lanes) + single-pass batch statistics.
#   outputs: z tiles (planes_pad, T), BN scale = gamma/sqrt(var+eps),
#            BN shift = beta - mean*scale   (finalized on the last tile).
# -----------------------------------------------------------------------------
def _conv_stats_kernel(x_ref, w_ref, g_ref, be_ref,
                       z_ref, scale_ref, shift_ref,
                       s1_ref, s2_ref, *, m_total, eps):
    i = pl.program_id(0)

    @pl.when(i == 0)
    def _init():
        s1_ref[...] = jnp.zeros_like(s1_ref)
        s2_ref[...] = jnp.zeros_like(s2_ref)
        scale_ref[...] = jnp.zeros_like(scale_ref)
        shift_ref[...] = jnp.zeros_like(shift_ref)

    # (planes_pad, CK8) @ (CK8, T) on the MXU; padded rows/cols are zero.
    z = jnp.dot(w_ref[...], x_ref[...], preferred_element_type=jnp.float32)
    z_ref[...] = z

    # Padded columns are exactly zero (no conv bias) -> they add nothing to the sums.
    s1_ref[...] += jnp.sum(z, axis=1, keepdims=True)
    s2_ref[...] += jnp.sum(z * z, axis=1, keepdims=True)

    @pl.when(i == pl.num_programs(0) - 1)
    def _finalize():
        inv_m = 1.0 / float(m_total)
        mean = s1_ref[...] * inv_m
        # E[z^2] - E[z]^2 in f32; clamp to guard against cancellation.
        var = jnp.maximum(s2_ref[...] * inv_m - mean * mean, 0.0)
        inv_std = lax.rsqrt(var + eps)           # EUP
        scale = g_ref[...] * inv_std
        scale_ref[...] = scale
        shift_ref[...] = be_ref[...] - mean * scale


# -----------------------------------------------------------------------------
# Pass 2: normalize + ReLU + AvgPool (pool = matmul with block-diag averaging matrix).
# -----------------------------------------------------------------------------
def _bn_relu_pool_kernel(z_ref, scale_ref, shift_ref, p_ref, o_ref):
    y = jnp.maximum(z_ref[...] * scale_ref[...] + shift_ref[...], 0.0)
    o_ref[...] = jnp.dot(y, p_ref[...], preferred_element_type=jnp.float32)


def _bn_relu_kernel(z_ref, scale_ref, shift_ref, o_ref):
    o_ref[...] = jnp.maximum(z_ref[...] * scale_ref[...] + shift_ref[...], 0.0)


# -----------------------------------------------------------------------------
# Wrapper: CNN_BasicBlock forward.
# -----------------------------------------------------------------------------
def cnn_basic_block(x, weight, bias, gamma, beta, *, kernel, stride,
                    padding=0, pool=True):
    """x: (N, C, L) f32; weight: (planes, C, kernel); bias/gamma/beta: (planes,)."""
    del bias  # cancels exactly under the training-mode BatchNorm that follows the conv

    N, C, L = x.shape
    planes = weight.shape[0]
    K = kernel
    l_out = (L + 2 * padding - K) // stride + 1

    p8 = _round_up(planes, 8)
    ck = C * K
    ck8 = _round_up(ck, 8)
    lo_pad = _round_up(l_out, 128)              # per-sample lane padding
    nb = max(1, min(512 // lo_pad, N))          # samples per pass-2 tile (~512 lanes)
    n_pad = _round_up(N, nb)
    m_cols = n_pad * lo_pad                     # padded lane extent of conv output
    m_total = N * l_out                         # true element count for BN stats
    t1 = _pick_lane_tile(m_cols)                # pass-1 lane tile (multiple of 128)

    # --- wrapper glue: im2col into (CK8, m_cols), sample-aligned & lane-padded ----
    # TODO(synk): im2col still duplicates the input K x in HBM; for very large inputs fold
    #             the K taps into pass 1 as shifted matmuls instead.
    x_p = jnp.pad(x.astype(jnp.float32),
                  ((0, n_pad - N), (0, 0), (padding, padding)))
    idx = stride * jnp.arange(l_out)[None, :] + jnp.arange(K)[:, None]   # (K, l_out)
    patches = x_p[:, :, idx]                               # (n_pad, C, K, l_out)
    patches = jnp.transpose(patches, (1, 2, 0, 3))         # (C, K, n_pad, l_out)
    patches = jnp.pad(patches, ((0, 0), (0, 0), (0, 0), (0, lo_pad - l_out)))
    patches = patches.reshape(ck, m_cols)
    patches = jnp.pad(patches, ((0, ck8 - ck), (0, 0)))

    w2 = jnp.pad(weight.astype(jnp.float32).reshape(planes, ck),
                 ((0, p8 - planes), (0, ck8 - ck)))
    g2 = jnp.pad(gamma.astype(jnp.float32), (0, p8 - planes)).reshape(p8, 1)
    be2 = jnp.pad(beta.astype(jnp.float32), (0, p8 - planes)).reshape(p8, 1)

    # --- pass 1: conv + batch stats ------------------------------------------------
    grid1 = (m_cols // t1,)
    z, scale, shift = pl.pallas_call(
        functools.partial(_conv_stats_kernel, m_total=m_total, eps=_BN_EPS),
        out_shape=(jax.ShapeDtypeStruct((p8, m_cols), jnp.float32),
                   jax.ShapeDtypeStruct((p8, 1), jnp.float32),
                   jax.ShapeDtypeStruct((p8, 1), jnp.float32)),
        grid_spec=pltpu.PrefetchScalarGridSpec(
            num_scalar_prefetch=0,
            grid=grid1,
            in_specs=[
                pl.BlockSpec((ck8, t1), lambda i: (0, i)),      # patches tile
                pl.BlockSpec((p8, ck8), lambda i: (0, 0)),      # weights (resident)
                pl.BlockSpec((p8, 1), lambda i: (0, 0)),        # gamma
                pl.BlockSpec((p8, 1), lambda i: (0, 0)),        # beta
            ],
            out_specs=[
                pl.BlockSpec((p8, t1), lambda i: (0, i)),       # z tiles (lane-dense)
                pl.BlockSpec((p8, 1), lambda i: (0, 0)),        # BN scale
                pl.BlockSpec((p8, 1), lambda i: (0, 0)),        # BN shift
            ],
            scratch_shapes=[pltpu.VMEM((p8, 1), jnp.float32),   # sum(z)
                            pltpu.VMEM((p8, 1), jnp.float32)],  # sum(z^2)
        ),
        compiler_params=pltpu.CompilerParams(dimension_semantics=("arbitrary",)),
    )(patches, w2, g2, be2)

    # --- pass 2: normalize + ReLU (+ fused AvgPool) ---------------------------------
    grid2 = (n_pad // nb,)
    if pool:
        l_pool = (l_out + 2 * padding - K) // stride + 1
        lp_pad = _round_up(l_pool, 128)
        # Per-sample averaging matrix (count_include_pad=True -> every tap weighs 1/K),
        # block-diagonal over the nb samples of one tile.  Zero rows for padded columns
        # keep any ReLU(shift) garbage in the padding from leaking into the pool output.
        # TODO(synk): O(l_out * l_pool) matrix; band/tile it for very long sequences.
        p1 = np.zeros((lo_pad, lp_pad), np.float32)
        for j in range(l_pool):
            for k in range(K):
                src = j * stride - padding + k
                if 0 <= src < l_out:
                    p1[src, j] = 1.0 / K
        pmat = jnp.asarray(np.kron(np.eye(nb, dtype=np.float32), p1))

        blk_in, blk_out = nb * lo_pad, nb * lp_pad
        y = pl.pallas_call(
            _bn_relu_pool_kernel,
            out_shape=jax.ShapeDtypeStruct((p8, n_pad * lp_pad), jnp.float32),
            grid_spec=pltpu.PrefetchScalarGridSpec(
                num_scalar_prefetch=0,
                grid=grid2,
                in_specs=[
                    pl.BlockSpec((p8, blk_in), lambda s: (0, s)),
                    pl.BlockSpec((p8, 1), lambda s: (0, 0)),
                    pl.BlockSpec((p8, 1), lambda s: (0, 0)),
                    pl.BlockSpec((blk_in, blk_out), lambda s: (0, 0)),
                ],
                out_specs=pl.BlockSpec((p8, blk_out), lambda s: (0, s)),
            ),
            compiler_params=pltpu.CompilerParams(dimension_semantics=("parallel",)),
        )(z, scale, shift, pmat)
        y = y.reshape(p8, n_pad, lp_pad)[:planes, :N, :l_pool]
    else:
        blk_in = nb * lo_pad
        y = pl.pallas_call(
            _bn_relu_kernel,
            out_shape=jax.ShapeDtypeStruct((p8, m_cols), jnp.float32),
            grid_spec=pltpu.PrefetchScalarGridSpec(
                num_scalar_prefetch=0,
                grid=grid2,
                in_specs=[
                    pl.BlockSpec((p8, blk_in), lambda s: (0, s)),
                    pl.BlockSpec((p8, 1), lambda s: (0, 0)),
                    pl.BlockSpec((p8, 1), lambda s: (0, 0)),
                ],
                out_specs=pl.BlockSpec((p8, blk_in), lambda s: (0, s)),
            ),
            compiler_params=pltpu.CompilerParams(dimension_semantics=("parallel",)),
        )(z, scale, shift)
        y = y.reshape(p8, n_pad, lo_pad)[:planes, :N, :l_out]

    return jnp.transpose(y, (1, 0, 2))  # -> (N, planes, L_out) in PyTorch NCL layout


# -----------------------------------------------------------------------------
# Pure-JAX reference (exact module semantics, including the conv bias).
# -----------------------------------------------------------------------------
def _reference(x, weight, bias, gamma, beta, *, kernel, stride, padding, pool):
    y = lax.conv_general_dilated(
        x, weight, window_strides=(stride,), padding=[(padding, padding)],
        dimension_numbers=("NCH", "OIH", "NCH"))
    y = y + bias[None, :, None]
    mean = jnp.mean(y, axis=(0, 2), keepdims=True)
    var = jnp.mean(jnp.square(y - mean), axis=(0, 2), keepdims=True)
    y = (y - mean) * lax.rsqrt(var + _BN_EPS)
    y = y * gamma[None, :, None] + beta[None, :, None]
    y = jnp.maximum(y, 0.0)
    if pool:
        l_pool = (y.shape[2] + 2 * padding - kernel) // stride + 1
        yp = jnp.pad(y, ((0, 0), (0, 0), (padding, padding)))
        acc = jnp.zeros((y.shape[0], y.shape[1], l_pool), jnp.float32)
        for k in range(kernel):
            acc = acc + yp[:, :, k::stride][:, :, :l_pool]
        y = acc / kernel
    return y


if __name__ == "__main__":
    # Small shapes consistent with the module: Conv1d input is (N, C, L).
    N, C, L = 2, 4, 16
    planes, kernel, stride, padding, pool = 8, 3, 1, 1, True

    key = jax.random.PRNGKey(0)
    kx, kw, kb, kg, kbe = jax.random.split(key, 5)
    x = jax.random.normal(kx, (N, C, L), dtype=jnp.float32)
    weight = jax.random.normal(kw, (planes, C, kernel), dtype=jnp.float32) * 0.1
    bias = jax.random.normal(kb, (planes,), dtype=jnp.float32) * 0.1
    gamma = 1.0 + 0.1 * jax.random.normal(kg, (planes,), dtype=jnp.float32)
    beta = 0.1 * jax.random.normal(kbe, (planes,), dtype=jnp.float32)

    out = cnn_basic_block(x, weight, bias, gamma, beta, kernel=kernel,
                          stride=stride, padding=padding, pool=pool)
    out = jax.block_until_ready(out)

    ref = _reference(x, weight, bias, gamma, beta, kernel=kernel,
                     stride=stride, padding=padding, pool=pool)
    assert out.shape == ref.shape, (out.shape, ref.shape)
    assert jnp.allclose(out, ref, rtol=1e-3, atol=1e-3), "mismatch vs reference"

    print("KERNEL_OK")
</pallas_src>

<mosaic_0001>
module attributes {stable_mosaic.version = 11 : i64} {
  func.func @_conv_stats_kernel(%arg0: i32, %arg1: memref<16x256xf32, #tpu.memory_space<vmem>>, %arg2: memref<8x16xf32, #tpu.memory_space<vmem>>, %arg3: memref<8x1xf32, #tpu.memory_space<vmem>>, %arg4: memref<8x1xf32, #tpu.memory_space<vmem>>, %arg5: memref<8x256xf32, #tpu.memory_space<vmem>>, %arg6: memref<8x1xf32, #tpu.memory_space<vmem>>, %arg7: memref<8x1xf32, #tpu.memory_space<vmem>>, %arg8: memref<8x1xf32, #tpu.memory_space<vmem>>, %arg9: memref<8x1xf32, #tpu.memory_space<vmem>>) attributes {dimension_semantics = [#tpu.dimension_semantics<arbitrary>], iteration_bounds = array<i64: 1>, scalar_prefetch = 0 : i64, scratch_operands = 2 : i64, tpu.core_type = #tpu.core_type<tc>, window_params = [{transform_indices = @transform_0, window_bounds = array<i64: 16, 256>}, {pipeline_mode = #tpu.pipeline_mode<synchronous>, transform_indices = @transform_1, window_bounds = array<i64: 8, 16>}, {pipeline_mode = #tpu.pipeline_mode<synchronous>, transform_indices = @transform_2, window_bounds = array<i64: 8, 1>}, {pipeline_mode = #tpu.pipeline_mode<synchronous>, transform_indices = @transform_3, window_bounds = array<i64: 8, 1>}, {transform_indices = @transform_4, window_bounds = array<i64: 8, 256>}, {pipeline_mode = #tpu.pipeline_mode<synchronous>, transform_indices = @transform_5, window_bounds = array<i64: 8, 1>}, {pipeline_mode = #tpu.pipeline_mode<synchronous>, transform_indices = @transform_6, window_bounds = array<i64: 8, 1>}]} {
    %c0_i32 = arith.constant 0 : i32
    %0 = arith.cmpi eq, %arg0, %c0_i32 : i32
    %1 = arith.extui %0 : i1 to i32
    %c0_i32_0 = arith.constant 0 : i32
    %2 = arith.cmpi ne, %1, %c0_i32_0 : i32
    scf.if %2 {
      %cst_18 = arith.constant 0.000000e+00 : f32
      %21 = vector.broadcast %cst_18 : f32 to vector<8x1xf32>
      %c0_19 = arith.constant 0 : index
      %c0_20 = arith.constant 0 : index
      %22 = vector.load %arg8[%c0_19, %c0_20] : memref<8x1xf32, #tpu.memory_space<vmem>>, vector<8x1xf32>
      tpu.vector_store %arg8[%c0_19, %c0_20], %21 {strides = array<i32>} : memref<8x1xf32, #tpu.memory_space<vmem>>, vector<8x1xf32>,
      %cst_21 = arith.constant 0.000000e+00 : f32
      %23 = vector.broadcast %cst_21 : f32 to vector<8x1xf32>
      %c0_22 = arith.constant 0 : index
      %c0_23 = arith.constant 0 : index
      %24 = vector.load %arg9[%c0_22, %c0_23] : memref<8x1xf32, #tpu.memory_space<vmem>>, vector<8x1xf32>
      tpu.vector_store %arg9[%c0_22, %c0_23], %23 {strides = array<i32>} : memref<8x1xf32, #tpu.memory_space<vmem>>, vector<8x1xf32>,
      %cst_24 = arith.constant 0.000000e+00 : f32
      %25 = vector.broadcast %cst_24 : f32 to vector<8x1xf32>
      %c0_25 = arith.constant 0 : index
      %c0_26 = arith.constant 0 : index
      %26 = vector.load %arg6[%c0_25, %c0_26] : memref<8x1xf32, #tpu.memory_space<vmem>>, vector<8x1xf32>
      tpu.vector_store %arg6[%c0_25, %c0_26], %25 {strides = array<i32>} : memref<8x1xf32, #tpu.memory_space<vmem>>, vector<8x1xf32>,
      %cst_27 = arith.constant 0.000000e+00 : f32
      %27 = vector.broadcast %cst_27 : f32 to vector<8x1xf32>
      %c0_28 = arith.constant 0 : index
      %c0_29 = arith.constant 0 : index
      %28 = vector.load %arg7[%c0_28, %c0_29] : memref<8x1xf32, #tpu.memory_space<vmem>>, vector<8x1xf32>
      tpu.vector_store %arg7[%c0_28, %c0_29], %27 {strides = array<i32>} : memref<8x1xf32, #tpu.memory_space<vmem>>, vector<8x1xf32>,
    } else {
    }
    %c0 = arith.constant 0 : index
    %c0_1 = arith.constant 0 : index
    %3 = vector.load %arg2[%c0, %c0_1] : memref<8x16xf32, #tpu.memory_space<vmem>>, vector<8x16xf32>
    %c0_2 = arith.constant 0 : index
    %c0_3 = arith.constant 0 : index
    %4 = vector.load %arg1[%c0_2, %c0_3] : memref<16x256xf32, #tpu.memory_space<vmem>>, vector<16x256xf32>
    %cst = arith.constant dense<0.000000e+00> : vector<8x256xf32>
    %5 = tpu.matmul %3, %4, %cst {dimension_numbers = #tpu.dot_dimension_numbers<[1], [0], [0], [1], [0, 0, 1, 1], [], []>} : vector<8x16xf32>, vector<16x256xf32>, vector<8x256xf32> -> vector<8x256xf32>
    %c0_4 = arith.constant 0 : index
    %c0_5 = arith.constant 0 : index
    %6 = vector.load %arg5[%c0_4, %c0_5] : memref<8x256xf32, #tpu.memory_space<vmem>>, vector<8x256xf32>
    tpu.vector_store %arg5[%c0_4, %c0_5], %5 {strides = array<i32>} : memref<8x256xf32, #tpu.memory_space<vmem>>, vector<8x256xf32>,
    %c0_6 = arith.constant 0 : index
    %c0_7 = arith.constant 0 : index
    %7 = vector.load %arg8[%c0_6, %c0_7] : memref<8x1xf32, #tpu.memory_space<vmem>>, vector<8x1xf32>
    %cst_8 = arith.constant dense<0.000000e+00> : vector<8xf32>
    %8 = vector.multi_reduction <add>, %5, %cst_8 [1] : vector<8x256xf32> to vector<8xf32>
    %9 = vector.shape_cast %8 : vector<8xf32> to vector<8x1xf32>
    %10 = arith.addf %7, %9 : vector<8x1xf32>
    %c0_9 = arith.constant 0 : index
    %c0_10 = arith.constant 0 : index
    %11 = vector.load %arg8[%c0_9, %c0_10] : memref<8x1xf32, #tpu.memory_space<vmem>>, vector<8x1xf32>
    tpu.vector_store %arg8[%c0_9, %c0_10], %10 {strides = array<i32>} : memref<8x1xf32, #tpu.memory_space<vmem>>, vector<8x1xf32>,
    %c0_11 = arith.constant 0 : index
    %c0_12 = arith.constant 0 : index
    %12 = vector.load %arg9[%c0_11, %c0_12] : memref<8x1xf32, #tpu.memory_space<vmem>>, vector<8x1xf32>
    %13 = arith.mulf %5, %5 : vector<8x256xf32>
    %cst_13 = arith.constant dense<0.000000e+00> : vector<8xf32>
    %14 = vector.multi_reduction <add>, %13, %cst_13 [1] : vector<8x256xf32> to vector<8xf32>
    %15 = vector.shape_cast %14 : vector<8xf32> to vector<8x1xf32>
    %16 = arith.addf %12, %15 : vector<8x1xf32>
    %c0_14 = arith.constant 0 : index
    %c0_15 = arith.constant 0 : index
    %17 = vector.load %arg9[%c0_14, %c0_15] : memref<8x1xf32, #tpu.memory_space<vmem>>, vector<8x1xf32>
    tpu.vector_store %arg9[%c0_14, %c0_15], %16 {strides = array<i32>} : memref<8x1xf32, #tpu.memory_space<vmem>>, vector<8x1xf32>,
    %c0_i32_16 = arith.constant 0 : i32
    %18 = arith.cmpi eq, %arg0, %c0_i32_16 : i32
    %19 = arith.extui %18 : i1 to i32
    %c0_i32_17 = arith.constant 0 : i32
    %20 = arith.cmpi ne, %19, %c0_i32_17 : i32
    scf.if %20 {
      %c0_18 = arith.constant 0 : index
      %c0_19 = arith.constant 0 : index
      %21 = vector.load %arg8[%c0_18, %c0_19] : memref<8x1xf32, #tpu.memory_space<vmem>>, vector<8x1xf32>
      %cst_20 = arith.constant 3.125000e-02 : f32
      %22 = vector.broadcast %cst_20 : f32 to vector<8x1xf32>
      %23 = arith.mulf %21, %22 : vector<8x1xf32>
      %c0_21 = arith.constant 0 : index
      %c0_22 = arith.constant 0 : index
      %24 = vector.load %arg9[%c0_21, %c0_22] : memref<8x1xf32, #tpu.memory_space<vmem>>, vector<8x1xf32>
      %cst_23 = arith.constant 3.125000e-02 : f32
      %25 = vector.broadcast %cst_23 : f32 to vector<8x1xf32>
      %26 = arith.mulf %24, %25 : vector<8x1xf32>
      %27 = arith.mulf %23, %23 : vector<8x1xf32>
      %28 = arith.subf %26, %27 : vector<8x1xf32>
      %cst_24 = arith.constant 0.000000e+00 : f32
      %29 = vector.broadcast %cst_24 : f32 to vector<8x1xf32>
      %30 = arith.maximumf %28, %29 : vector<8x1xf32>
      %cst_25 = arith.constant 9.99999974E-6 : f32
      %31 = vector.broadcast %cst_25 : f32 to vector<8x1xf32>
      %32 = arith.addf %30, %31 : vector<8x1xf32>
      %33 = math.rsqrt %32 : vector<8x1xf32>
      %c0_26 = arith.constant 0 : index
      %c0_27 = arith.constant 0 : index
      %34 = vector.load %arg3[%c0_26, %c0_27] : memref<8x1xf32, #tpu.memory_space<vmem>>, vector<8x1xf32>
      %35 = arith.mulf %34, %33 : vector<8x1xf32>
      %c0_28 = arith.constant 0 : index
      %c0_29 = arith.constant 0 : index
      %36 = vector.load %arg6[%c0_28, %c0_29] : memref<8x1xf32, #tpu.memory_space<vmem>>, vector<8x1xf32>
      tpu.vector_store %arg6[%c0_28, %c0_29], %35 {strides = array<i32>} : memref<8x1xf32, #tpu.memory_space<vmem>>, vector<8x1xf32>,
      %c0_30 = arith.constant 0 : index
      %c0_31 = arith.constant 0 : index
      %37 = vector.load %arg4[%c0_30, %c0_31] : memref<8x1xf32, #tpu.memory_space<vmem>>, vector<8x1xf32>
      %38 = arith.mulf %23, %35 : vector<8x1xf32>
      %39 = arith.subf %37, %38 : vector<8x1xf32>
      %c0_32 = arith.constant 0 : index
      %c0_33 = arith.constant 0 : index
      %40 = vector.load %arg7[%c0_32, %c0_33] : memref<8x1xf32, #tpu.memory_space<vmem>>, vector<8x1xf32>
      tpu.vector_store %arg7[%c0_32, %c0_33], %39 {strides = array<i32>} : memref<8x1xf32, #tpu.memory_space<vmem>>, vector<8x1xf32>,
    } else {
    }
    return
  }
  func.func @transform_0(%arg0: i32) -> (i32, i32) {
    %c0_i32 = arith.constant 0 : i32
    %c0_i32_0 = arith.constant 0 : i32
    return %c0_i32, %arg0 : i32, i32
  }
  func.func @transform_1(%arg0: i32) -> (i32, i32) {
    %c0_i32 = arith.constant 0 : i32
    %c0_i32_0 = arith.constant 0 : i32
    %c0_i32_1 = arith.constant 0 : i32
    return %c0_i32, %c0_i32_0 : i32, i32
  }
  func.func @transform_2(%arg0: i32) -> (i32, i32) {
    %c0_i32 = arith.constant 0 : i32
    %c0_i32_0 = arith.constant 0 : i32
    %c0_i32_1 = arith.constant 0 : i32
    return %c0_i32, %c0_i32_0 : i32, i32
  }
  func.func @transform_3(%arg0: i32) -> (i32, i32) {
    %c0_i32 = arith.constant 0 : i32
    %c0_i32_0 = arith.constant 0 : i32
    %c0_i32_1 = arith.constant 0 : i32
    return %c0_i32, %c0_i32_0 : i32, i32
  }
  func.func @transform_4(%arg0: i32) -> (i32, i32) {
    %c0_i32 = arith.constant 0 : i32
    %c0_i32_0 = arith.constant 0 : i32
    return %c0_i32, %arg0 : i32, i32
  }
  func.func @transform_5(%arg0: i32) -> (i32, i32) {
    %c0_i32 = arith.constant 0 : i32
    %c0_i32_0 = arith.constant 0 : i32
    %c0_i32_1 = arith.constant 0 : i32
    return %c0_i32, %c0_i32_0 : i32, i32
  }
  func.func @transform_6(%arg0: i32) -> (i32, i32) {
    %c0_i32 = arith.constant 0 : i32
    %c0_i32_0 = arith.constant 0 : i32
    %c0_i32_1 = arith.constant 0 : i32
    return %c0_i32, %c0_i32_0 : i32, i32
  }
}

</mosaic_0001>

<bundles_post_ra>
// kernel: tpu_custom_call.1
= control target key start
LH: loop header
LB: loop body
LE: loop exit
PB: predicated region body
PF: predicated region fallthrough
CT: control target
= control target key end

     0   :  { %12 = vsyncpa [#allocation5], 0  ;;  %s336_s0 = inlined_call_operand.hbm [shape: f32[16,256], index: 0, kind: input, shape index: {}]   ;;  %s337_s1 = inlined_call_operand.vmem [shape: f32[8,16], index: 1, kind: input, shape index: {}]   ;;  %s338_s2 = inlined_call_operand.vmem [shape: f32[8,1], index: 2, kind: input, shape index: {}]   ;;  %s339_s3 = inlined_call_operand.vmem [shape: f32[8,1], index: 3, kind: input, shape index: {}]   ;;  %s340_s4 = inlined_call_operand.hbm [shape: f32[8,256], index: 4, kind: output, shape index: {0}]   ;;  %s341_s5 = inlined_call_operand.vmem [shape: f32[8,1], index: 5, kind: output, shape index: {1}]   ;;  %s342_s6 = inlined_call_operand.vmem [shape: f32[8,1], index: 6, kind: output, shape index: {2}]  }
   0x1   :  { %13 = vsyncpa [#allocation6], 0  ;;  %s243_s21 = smov [#allocation4]   ;;  %s195_s25 = scalar_lea.hbm %s336_s0, 512 }
   0x2   :  { %s19_s22 = sshll.u32 %s243_s21, 4  ;;  %p196_p0 = scmp.ne.s32.totalorder %s336_s0, %s195_s25  ;;  %s20_s22 = int_to_ptr.vmem [resolvable:$true] %s19_s22 }
   0x3   :  { %p199_p1 = scmp.lt.u32.totalorder %s195_s25, %s336_s0 }
   0x5   :  { %p201_p2 = pnand %p199_p1, %p196_p0 }
   0x7   :  { %204 = shalt.err (!%p201_p2)
}
   0x8   :  { %s205_s30 = scalar_lea.vmem %s20_s22, 512  ;;  %p210_p4 = scmp.lt.s32.totalorder %s20_s22, %s20_s22 }
   0x9   :  { %p206_p3 = scmp.ne.s32.totalorder %s20_s22, %s205_s30  ;;  %p211_p5 = scmp.lt.s32.totalorder %s205_s30, %s205_s30 }
   0xb   :  { %p212_p6 = por %p211_p5, %p210_p4 }
   0xd   :  { %p213_p7 = pnand %p212_p6, %p206_p3 }
   0xf   :  { %216 = shalt.err (!%p213_p7)
}
  0x10   :  { %s244_s7 = smov 256   ;;  %s245_s8 = smov 16  }
  0x11   :  { %25 = dma.hbm_to_vmem [thread:$0]  %s336_s0, 512, %s20_s22, [#allocation5], %s244_s7, %s244_s7, %s245_s8  }
  0x12   :  { %239 = dma.done.wait [#allocation5], 512  }
  0x13   :  { %240 = vsyncadd [#allocation5], 4294966784  ;;  %vm39_vm0 = vcmask 7168   ;;  %v246_v0 = vmov 0.0   ;;  %v46_v1 = vld [vmem:[#allocation4 + $0x8] sm:$0xff]  ;;  %v48_v2 = vld [vmem:[#allocation4 + $0x18] sm:$0xff] }
  0x14   :  { %40 = vst.msk [vmem:[#allocation2] sm:$0xff] %vm39_vm0, %v246_v0  ;;  %41 = vst.msk [vmem:[#allocation3] sm:$0xff] %vm39_vm0, %v246_v0  ;;  %117 = vmatprep.mubr.f32.mxu0 %v246_v0  ;;  %v45_v3 = vld [vmem:[#allocation4] sm:$0xff]  ;;  %v184_v4 = vpack.c.bf16 %v48_v2, %v46_v1  ;;  %v47_v5 = vld [vmem:[#allocation4 + $0x10] sm:$0xff]  ;;  %vm49_vm1 = vcmask 130048   ;;  %s247_s16 = smov [#allocation7]  }
  0x15   :  { %42 = vst.msk [vmem:[%s341_s5] sm:$0xff] %vm39_vm0, %v246_v0  ;;  %43 = vst.msk [vmem:[%s342_s6] sm:$0xff] %vm39_vm0, %v246_v0  ;;  %v186_v6 = vpack.c.bf16 %v47_v5, %v45_v3  ;;  %v44_v7 = vld [vmem:[%s337_s1] sm:$0xff]  ;;  %s166_s17 = sshll.u32 %s247_s16, 4  ;;  %s167_s17 = int_to_ptr.vmem [resolvable:$true] %s166_s17 }
  0x16   :  { %185 = vmatprep.subr.bf16.mxu0 %v184_v4  ;;  %s217_s18 = scalar_lea.vmem %s167_s17, 256  ;;  %p222_p9 = scmp.lt.s32.totalorder %s167_s17, %s167_s17 }
  0x17   :  { %187 = vmatpush1.bf16.msra.mxu0 %v186_v6  ;;  %p218_p8 = scmp.ne.s32.totalorder %s167_s17, %s217_s18  ;;  %p223_p10 = scmp.lt.s32.totalorder %s217_s18, %s217_s18 }
  0x19   :  { %p224_p11 = por %p223_p10, %p222_p9 }
  0x1a   :  { %183 = vmatmul.mubr.msk.f32.vlgmr.msra.gmra.mrb[0].mxu0 %vm49_vm1, %v44_v7 }
  0x1b   :  { %p225_p12 = pnand %p224_p11, %p218_p8 }
  0xed   :  { %v119_v8 = vpop.f32.mrb[0].mxu0 }
  0xee   :  { %124 = vst [vmem:[#allocation7] sm:$0xff] %v119_v8  ;;  %v121_v9 = vpop.f32.mrb[1].mxu0  ;;  %v134_v10 = vmul.f32 %v119_v8, %v119_v8 }
  0xef   :  { %125 = vst [vmem:[#allocation7 + $0x8] sm:$0xff] %v121_v9  ;;  %v135_v11 = vmul.f32 %v121_v9, %v121_v9  ;;  %v127_v12 = vadd.f32 %v121_v9, %v119_v8 }
  0xf1   :  { %128 = vadd.xlane.f32.xlu0 %v127_v12  ;;  %v136_v13 = vadd.f32 %v135_v11, %v134_v10 }
  0xf5   :  { %137 = vadd.xlane.f32.xlu0 %v136_v13 }
  0xf6   :  { %228 = shalt.err (!%p225_p12)
}
  0xf7   :  { %s229_s20 = scalar_lea.hbm %s340_s4, 256 }
  0xf8   :  { %p230_p13 = scmp.ne.s32.totalorder %s340_s4, %s229_s20  ;;  %p233_p0 = scmp.lt.u32.totalorder %s229_s20, %s340_s4 }
  0xfa   :  { %p235_p1 = pnand %p233_p0, %p230_p13 }
  0xfc   :  { %238 = shalt.err (!%p235_p1)
}
  0xfd   :  { %169 = dma.vmem_to_hbm [thread:$0]  %s167_s17, 256, %s340_s4, [#allocation6]   ;;  %v126_v14 = vld [vmem:[#allocation2] sm:$0xff]  ;;  %v133_v17 = vld [vmem:[#allocation3] sm:$0xff] }
  0xfe   :  { %v153_v28 = vld [vmem:[%s338_s2] sm:$0xff] }
  0xff   :  { %v156_v31 = vld [vmem:[%s339_s3] sm:$0xff] }
 0x17e   :  { %v129_v15 = vpop.xlane.xlu0 %128 }
 0x17f   :  { %v130_v16 = vadd.f32 %v129_v15, %v126_v14 }
 0x181   :  { %132 = vst.msk [vmem:[#allocation2] sm:$0xff] %vm39_vm0, %v130_v16 }
 0x182   :  { %v138_v18 = vpop.xlane.xlu0 %137 }
 0x183   :  { %v139_v19 = vadd.f32 %v138_v18, %v133_v17 }
 0x185   :  { %140 = vst.msk [vmem:[#allocation3] sm:$0xff] %vm39_vm0, %v139_v19 }
 0x188   :  { %v144_v20 = vld [vmem:[#allocation2] sm:$0xff] }
 0x189   :  { %v145_v21 = vmul.f32 0.03125, %v144_v20 }
 0x18b   :  { %v148_v23 = vmul.f32 %v145_v21, %v145_v21 }
 0x18c   :  { %v146_v22 = vld [vmem:[#allocation3] sm:$0xff] }
 0x18d   :  { %v147_v24 = vmul.f32 0.03125, %v146_v22 }
 0x18f   :  { %v149_v25 = vsub.f32 %v147_v24, %v148_v23 }
 0x191   :  { %v150_v26 = vmax.f32 %v149_v25, 0.0 }
 0x193   :  { %v151_v27 = vadd.f32 1e-05, %v150_v26 }
 0x195   :  { %193 = vrsqrt.f32 %v151_v27 }
 0x19f   :  { %v194_v29 = vpop.eup %193 }
 0x1a0   :  { %v154_v30 = vmul.f32 %v194_v29, %v153_v28 }
 0x1a2   :  { %155 = vst.msk [vmem:[%s341_s5] sm:$0xff] %vm39_vm0, %v154_v30  ;;  %v157_v32 = vmul.f32 %v154_v30, %v145_v21 }
 0x1a4   :  { %v158_v33 = vsub.f32 %v156_v31, %v157_v32 }
 0x1a6   :  { %159 = vst.msk [vmem:[%s342_s6] sm:$0xff] %vm39_vm0, %v158_v33 }
 0x1a7   :  { %241 = dma.done.wait [#allocation6], 256  }
 0x1a8   :  { %242 = vsyncadd [#allocation6], 4294967040 }
 0x1a9   :  { %181 = vsyncpa [#allocation5], 1 }
 0x1aa   :  { %182 = vsyncpa [#allocation6], 1 }

</bundles_post_ra>
